<compile_context>
chip_gen: v7x
topology: tpu7x:2x2x1
jax: 0.10.0
libtpu: 0.0.40
codegen_flags: <defaults>
</compile_context>

<pallas_src>
import functools

import jax
import jax.numpy as jnp
from jax import lax
from jax.experimental import pallas as pl
from jax.experimental.pallas import tpu as pltpu

_LANES = 128


def _round_up(x, m):
    return ((x + m - 1) // m) * m


def _ratp_kernel(params_ref, yp_ref, y_ref, out_ref, *, chunk_rows, n_chunks):
    """Grid = (num_parallel, tiles_per_core); out_ref block is (1, 8, 128)."""
    t = pl.program_id(1)

    @pl.when(t == 0)
    def _():
        out_ref[...] = jnp.zeros_like(out_ref)

    # Scalar weights precomputed in the wrapper (cheap SMEM reads, once/step).
    w_pos = params_ref[0]   # 1 + l*(1-a)
    w_neg = params_ref[1]   # l*a
    c_yp = params_ref[2]    # l*(1-a)

    def body(ci, acc):
        r0 = pl.multiple_of(ci * chunk_rows, chunk_rows)
        y = y_ref[pl.ds(r0, chunk_rows), :]
        fx = yp_ref[pl.ds(r0, chunk_rows), :]
        # Explicit +1 / -1 masks: labels outside {+1,-1} (incl. the zero
        # padding) contribute exactly 0, matching the PyTorch reference.
        pos = (y == 1.0).astype(jnp.float32)
        neg = (y == -1.0).astype(jnp.float32)
        hinge = jnp.maximum(1.0 - y * fx, 0.0)
        # (1+l(1-a))*[y==+1]*hinge + l*a*[y==-1]*hinge - l*(1-a)*[y==+1]
        contrib = (w_pos * pos + w_neg * neg) * hinge - c_yp * pos
        return acc + contrib

    acc = lax.fori_loop(0, n_chunks, body,
                        jnp.zeros((chunk_rows, _LANES), jnp.float32),
                        unroll=True)

    # Fold the (chunk_rows, 128) register accumulator into one (8, 128) vreg
    # row with full-vreg VPU adds (no cross-sublane XLU reduction in-kernel).
    folded = acc[0:8, :]
    for g in range(1, chunk_rows // 8):
        folded = folded + acc[g * 8:(g + 1) * 8, :]
    out_ref[...] += jnp.reshape(folded, (1, 8, _LANES))


def ratp_loss(y_pred, y, a, l, *, tile_rows=1024, num_parallel=2):
    """Forward pass of RatPLoss: RatP(y_pred, y, l, a) / len(y).

    y_pred, y: same shape, leading dim B = len(y); y holds labels in {+1,-1}.
    a: anchor (scalar), l: lambda parameter (scalar).  Returns a (1,) array,
    like the PyTorch module (whose `l` is a 1-element Parameter).
    """
    y_pred = jnp.asarray(y_pred, jnp.float32)
    y = jnp.asarray(y, jnp.float32)
    assert y_pred.shape == y.shape
    B = y.shape[0]                           # len(y) in the PyTorch forward

    # The loss is a flat sum over all elements: flatten and repack into a
    # lane-dense (rows, 128) layout independent of the original shape.
    yp_flat = y_pred.reshape(-1)
    y_flat = y.reshape(-1)
    n = yp_flat.shape[0]
    rows = pl.cdiv(n, _LANES)

    a = jnp.asarray(a, jnp.float32).reshape(())
    l = jnp.asarray(l, jnp.float32).reshape(())
    params = jnp.stack([1.0 + l * (1.0 - a),    # weight on positive hinge
                        l * a,                  # weight on negative hinge
                        l * (1.0 - a)])         # weight on the Yp correction

    # --- tile geometry ------------------------------------------------------
    # Default 1024 rows x 128 lanes = 512 KiB per input block; double-buffered
    # y_pred + y ~= 2 MiB, far inside every generation's scoped-VMEM default,
    # while amortizing per-grid-step pipeline overhead.  Don't over-pad tiny
    # inputs: cap the tile at the per-core row count.
    tr = min(tile_rows, _round_up(pl.cdiv(rows, num_parallel), 8))
    tr = max(8, _round_up(tr, 8))
    if tr >= 32:
        tr = _round_up(tr, 32)               # keep the 32-sublane chunk path

    total_tiles = _round_up(pl.cdiv(rows, tr), num_parallel)
    tiles_per_core = total_tiles // num_parallel
    padded_n = total_tiles * tr * _LANES
    if padded_n != n:
        pad = padded_n - n                   # zero labels -> zero contribution
        yp_flat = jnp.pad(yp_flat, (0, pad))
        y_flat = jnp.pad(y_flat, (0, pad))
    yp2 = yp_flat.reshape(total_tiles * tr, _LANES)
    y2 = y_flat.reshape(total_tiles * tr, _LANES)

    # Inner register-chunk size: <=32 sublanes (4 accumulator vregs).
    chunk = 32 if tr % 32 == 0 else (16 if tr % 16 == 0 else 8)
    n_chunks = tr // chunk

    kernel = functools.partial(_ratp_kernel, chunk_rows=chunk, n_chunks=n_chunks)
    smem_spec = pl.BlockSpec(memory_space=pltpu.MemorySpace.SMEM)

    def tile_map(p, t):
        return (p * tiles_per_core + t, 0)

    partials = pl.pallas_call(
        kernel,
        out_shape=jax.ShapeDtypeStruct((num_parallel, 8, _LANES), jnp.float32),
        grid=(num_parallel, tiles_per_core),
        in_specs=[
            smem_spec,                                  # (3,) scalar weights
            pl.BlockSpec((tr, _LANES), tile_map),       # y_pred tile
            pl.BlockSpec((tr, _LANES), tile_map),       # y tile
        ],
        out_specs=pl.BlockSpec((1, 8, _LANES), lambda p, t: (p, 0, 0)),
        compiler_params=pltpu.CompilerParams(
            dimension_semantics=("parallel", "arbitrary")),
    )(params, yp2, y2)

    # Tiny finalize outside the kernel: fold the per-core/sublane/lane
    # partials and scale by 1/len(y).
    return jnp.reshape(jnp.sum(partials) / B, (1,))


def ratp_loss_ref(y_pred, y, a, l):
    """Pure-JAX reference mirroring the PyTorch RatPLoss.forward exactly."""
    y_pred = jnp.asarray(y_pred, jnp.float32)
    y = jnp.asarray(y, jnp.float32)
    hinge = jnp.maximum(1.0 - y * y_pred, 0.0)                  # lh
    Lp = jnp.sum((y == 1.0).astype(jnp.float32) * hinge)
    Ln = jnp.sum((y == -1.0).astype(jnp.float32) * hinge)
    Yp = jnp.sum((y == 1.0).astype(jnp.float32))
    ratpg = a * Ln + (1.0 - a) * Lp - (1.0 - a) * Yp
    ratp = Lp + l * ratpg                                       # RatPf + l*RatPg
    return jnp.reshape(ratp / y.shape[0], (1,))


if __name__ == "__main__":
    key = jax.random.PRNGKey(0)
    k1, k2 = jax.random.split(key)

    B, D = 16, 128
    y_pred = jax.random.normal(k1, (B, D), dtype=jnp.float32)
    y = jnp.where(jax.random.bernoulli(k2, 0.3, (B, D)), 1.0, -1.0).astype(jnp.float32)

    a = 0.5   # anchor passed to RatPLoss(a)
    l = 0.1   # nn.Parameter init in RatPLoss.__init__

    out = jax.block_until_ready(ratp_loss(y_pred, y, a, l))
    ref = ratp_loss_ref(y_pred, y, a, l)
    assert out.shape == (1,)
    assert jnp.allclose(out, ref, rtol=1e-4, atol=1e-4), (out, ref)

    # Also exercise an odd, non-aligned shape through the same padded path.
    B2 = 13
    yp2 = jax.random.normal(k1, (B2, 37), dtype=jnp.float32)
    y2 = jnp.where(jax.random.bernoulli(k2, 0.5, (B2, 37)), 1.0, -1.0).astype(jnp.float32)
    out2 = jax.block_until_ready(ratp_loss(yp2, y2, a, l))
    ref2 = ratp_loss_ref(yp2, y2, a, l)
    assert jnp.allclose(out2, ref2, rtol=1e-4, atol=1e-4), (out2, ref2)

    # TODO(synk): RatPLoss.rev() flips the gradient sign of the l parameter;
    # it is a training-time hook with no forward-pass equivalent, so it is
    # not ported.
    print("KERNEL_OK")
</pallas_src>

<mosaic_0001>
module attributes {stable_mosaic.version = 11 : i64} {
  func.func @_ratp_kernel(%arg0: i32, %arg1: i32, %arg2: memref<3xf32, #tpu.memory_space<smem>>, %arg3: memref<8x128xf32, #tpu.memory_space<vmem>>, %arg4: memref<8x128xf32, #tpu.memory_space<vmem>>, %arg5: memref<1x8x128xf32, #tpu.memory_space<vmem>>) attributes {dimension_semantics = [#tpu.dimension_semantics<parallel>, #tpu.dimension_semantics<arbitrary>], iteration_bounds = array<i64: 2, 1>, scalar_prefetch = 0 : i64, scratch_operands = 0 : i64, tpu.core_type = #tpu.core_type<tc>, window_params = [{transform_indices = @transform_0, window_bounds = array<i64: 3>}, {transform_indices = @transform_1, window_bounds = array<i64: 8, 128>}, {transform_indices = @transform_2, window_bounds = array<i64: 8, 128>}, {transform_indices = @transform_3, window_bounds = array<i64: 1, 8, 128>}]} {
    %c0_i32 = arith.constant 0 : i32
    %0 = arith.cmpi eq, %arg1, %c0_i32 : i32
    %1 = arith.extui %0 : i1 to i32
    %c0_i32_0 = arith.constant 0 : i32
    %2 = arith.cmpi ne, %1, %c0_i32_0 : i32
    scf.if %2 {
      %cst_14 = arith.constant 0.000000e+00 : f32
      %40 = vector.broadcast %cst_14 : f32 to vector<1x8x128xf32>
      %c0_15 = arith.constant 0 : index
      %c0_16 = arith.constant 0 : index
      %c0_17 = arith.constant 0 : index
      %41 = vector.load %arg5[%c0_15, %c0_16, %c0_17] : memref<1x8x128xf32, #tpu.memory_space<vmem>>, vector<1x8x128xf32>
      tpu.vector_store %arg5[%c0_15, %c0_16, %c0_17], %40 {strides = array<i32>} : memref<1x8x128xf32, #tpu.memory_space<vmem>>, vector<1x8x128xf32>,
    } else {
    }
    %c0 = arith.constant 0 : index
    %3 = memref.load %arg2[%c0] : memref<3xf32, #tpu.memory_space<smem>>
    %c1 = arith.constant 1 : index
    %4 = memref.load %arg2[%c1] : memref<3xf32, #tpu.memory_space<smem>>
    %c2 = arith.constant 2 : index
    %5 = memref.load %arg2[%c2] : memref<3xf32, #tpu.memory_space<smem>>
    %cst = arith.constant 0.000000e+00 : f32
    %6 = vector.broadcast %cst : f32 to vector<8x128xf32>
    %c0_i32_1 = arith.constant 0 : i32
    %c8_i32 = arith.constant 8 : i32
    %7 = arith.muli %c0_i32_1, %c8_i32 : i32
    %8 = tpu.assume_multiple %7, 8 : i32
    %9 = arith.index_cast %8 : i32 to index
    %c0_2 = arith.constant 0 : index
    %10 = vector.load %arg4[%9, %c0_2] : memref<8x128xf32, #tpu.memory_space<vmem>>, vector<8x128xf32>
    %11 = arith.index_cast %8 : i32 to index
    %c0_3 = arith.constant 0 : index
    %12 = vector.load %arg3[%11, %c0_3] : memref<8x128xf32, #tpu.memory_space<vmem>>, vector<8x128xf32>
    %cst_4 = arith.constant 1.000000e+00 : f32
    %13 = vector.broadcast %cst_4 : f32 to vector<8x128xf32>
    %14 = arith.cmpf oeq, %10, %13 : vector<8x128xf32>
    %15 = arith.extui %14 : vector<8x128xi1> to vector<8x128xi32>
    %16 = arith.sitofp %15 : vector<8x128xi32> to vector<8x128xf32>
    %cst_5 = arith.constant -1.000000e+00 : f32
    %17 = vector.broadcast %cst_5 : f32 to vector<8x128xf32>
    %18 = arith.cmpf oeq, %10, %17 : vector<8x128xf32>
    %19 = arith.extui %18 : vector<8x128xi1> to vector<8x128xi32>
    %20 = arith.sitofp %19 : vector<8x128xi32> to vector<8x128xf32>
    %21 = arith.mulf %10, %12 : vector<8x128xf32>
    %cst_6 = arith.constant 1.000000e+00 : f32
    %22 = vector.broadcast %cst_6 : f32 to vector<8x128xf32>
    %23 = arith.subf %22, %21 : vector<8x128xf32>
    %cst_7 = arith.constant 0.000000e+00 : f32
    %24 = vector.broadcast %cst_7 : f32 to vector<8x128xf32>
    %25 = arith.maximumf %23, %24 : vector<8x128xf32>
    %26 = vector.broadcast %3 : f32 to vector<8x128xf32>
    %27 = arith.mulf %26, %16 : vector<8x128xf32>
    %28 = vector.broadcast %4 : f32 to vector<8x128xf32>
    %29 = arith.mulf %28, %20 : vector<8x128xf32>
    %30 = arith.addf %27, %29 : vector<8x128xf32>
    %31 = arith.mulf %30, %25 : vector<8x128xf32>
    %32 = vector.broadcast %5 : f32 to vector<8x128xf32>
    %33 = arith.mulf %32, %16 : vector<8x128xf32>
    %34 = arith.subf %31, %33 : vector<8x128xf32>
    %35 = arith.addf %6, %34 : vector<8x128xf32>
    %c1_i32 = arith.constant 1 : i32
    %c0_8 = arith.constant 0 : index
    %c0_9 = arith.constant 0 : index
    %c0_10 = arith.constant 0 : index
    %36 = vector.load %arg5[%c0_8, %c0_9, %c0_10] : memref<1x8x128xf32, #tpu.memory_space<vmem>>, vector<1x8x128xf32>
    %37 = vector.shape_cast %35 : vector<8x128xf32> to vector<1x8x128xf32>
    %38 = arith.addf %36, %37 : vector<1x8x128xf32>
    %c0_11 = arith.constant 0 : index
    %c0_12 = arith.constant 0 : index
    %c0_13 = arith.constant 0 : index
    %39 = vector.load %arg5[%c0_11, %c0_12, %c0_13] : memref<1x8x128xf32, #tpu.memory_space<vmem>>, vector<1x8x128xf32>
    tpu.vector_store %arg5[%c0_11, %c0_12, %c0_13], %38 {strides = array<i32>} : memref<1x8x128xf32, #tpu.memory_space<vmem>>, vector<1x8x128xf32>,
    return
  }
  func.func @transform_0(%arg0: i32, %arg1: i32) -> i32 {
    %c0_i32 = arith.constant 0 : i32
    %c0_i32_0 = arith.constant 0 : i32
    return %c0_i32 : i32
  }
  func.func @transform_1(%arg0: i32, %arg1: i32) -> (i32, i32) {
    %c1_i32 = arith.constant 1 : i32
    %0 = arith.muli %arg0, %c1_i32 : i32
    %1 = arith.addi %0, %arg1 : i32
    %c0_i32 = arith.constant 0 : i32
    %c0_i32_0 = arith.constant 0 : i32
    return %1, %c0_i32 : i32, i32
  }
  func.func @transform_2(%arg0: i32, %arg1: i32) -> (i32, i32) {
    %c1_i32 = arith.constant 1 : i32
    %0 = arith.muli %arg0, %c1_i32 : i32
    %1 = arith.addi %0, %arg1 : i32
    %c0_i32 = arith.constant 0 : i32
    %c0_i32_0 = arith.constant 0 : i32
    return %1, %c0_i32 : i32, i32
  }
  func.func @transform_3(%arg0: i32, %arg1: i32) -> (i32, i32, i32) {
    %c0_i32 = arith.constant 0 : i32
    %c0_i32_0 = arith.constant 0 : i32
    %c0_i32_1 = arith.constant 0 : i32
    return %arg0, %c0_i32, %c0_i32_0 : i32, i32, i32
  }
}

</mosaic_0001>

<bundles_post_ra>
// kernel: tpu_custom_call.1
= control target key start
LH: loop header
LB: loop body
LE: loop exit
PB: predicated region body
PF: predicated region fallthrough
CT: control target
= control target key end

     0   :  { %s972_s0 = inlined_call_operand.hbm [shape: f32[3], index: 0, kind: input, shape index: {}]   ;;  %s973_s1 = inlined_call_operand.hbm [shape: f32[16,128], index: 1, kind: input, shape index: {}]   ;;  %s974_s2 = inlined_call_operand.hbm [shape: f32[16,128], index: 2, kind: input, shape index: {}]   ;;  %s975_s3 = inlined_call_operand.hbm [shape: f32[2,8,128], index: 3, kind: output, shape index: {}]  }
   0x1   :  { %982 = sst [smem:[#allocation14_spill]] %s972_s0 }
   0x2   :  { %983 = sst [smem:[#allocation15_spill]] %s973_s1 }
   0x3   :  { %8 = vsyncpa [#allocation5], 0 }
   0x4   :  { %9 = vsyncpa [#allocation3], 0 }
   0x5   :  { %11 = vsyncpa [#allocation3 + $0x1], 0 }
   0x6   :  { %12 = vsyncpa [#allocation8], 0 }
   0x7   :  { %14 = vsyncpa [#allocation8 + $0x1], 0 }
   0x8   :  { %15 = vsyncpa [#allocation4], 0 }
   0x9   :  { %17 = vsyncpa [#allocation4 + $0x1], 0  ;;  %s707_s12 = smov 0   ;;  %s709_s13 = smov 0  }
   0xa   :  { %s711_s14 = smov 0   ;;  %s713_s15 = smov 0  }
   0xb   :  { %s715_s16 = smov 0   ;;  %s717_s17 = smov 0  }
   0xc LB: > { %s416_s18 = sadd.s32 4294967295, %s680_s17   ;;  %s417_s19 = sadd.s32 4294967294, %s680_s17   ;;  %s680_s17 = sphi %s717_s17, %s23_s17   ;;  %s676_s16 = sphi %s715_s16, %s1006_s16   ;;  %s672_s15 = sphi %s713_s15, %s1005_s15   ;;  %s668_s14 = sphi %s711_s14, %s1004_s14   ;;  %s664_s13 = sphi %s709_s13, %s1003_s13   ;;  %s660_s12 = sphi %s707_s12, %s1002_s12  }
   0xd   : > { %p72_p0 = scmp.ne.s32.totalorder %s668_s14, %s664_s13  ;;  %p78_p1 = scmp.ne.s32.totalorder %s664_s13, %s660_s12 }
   0xe   : > { %p743_p2 = scmp.eq.s32.totalorder %s416_s18, 0  ;;  %p130_p3 = scmp.eq.s32.totalorder %s416_s18, 1 }
   0xf   : > { %p136_p4 = scmp.eq.s32.totalorder %s417_s19, 1  ;;  %p418_p5 = scmp.ge.s32.totalorder %s680_s17, 1 }
  0x10   : > { %s984_s20 = scalar_select %p743_p2, 1, 0 }
  0x11   : > { %p750_p6 = por %p743_p2, %p78_p1  ;;  %p757_p7 = por %p130_p3, %p72_p0 }
  0x12   : > { %p761_p8 = por %p136_p4, %p78_p1  ;;  %p143_p9 = scmp.lt.s32.totalorder %s680_s17, 3 }
  0x13   : > { %s985_s21 = scalar_select %p750_p6, 1, 0 }
  0x14   : > { %s986_s22 = scalar_select %p757_p7, 1, 0 }
  0x15   : > { %s987_s23 = scalar_select %p761_p8, 1, 0 }
  0x16   : > { %p766_p10 = pnand %p418_p5, %p143_p9  ;;  %s65_s25 = sadd.s32 1, %s668_s14 }
  0x17   : > { %s35_s26 = sadd.s32 1, %s676_s16  ;;  %p73_p13 = scmp.eq.s32.totalorder %s680_s17, 0 }
  0x18   : > { %s988_s24 = scalar_select %p766_p10, 1, 0 }
  0x19   : > { %p448_p12 = pneg %p766_p10  ;;  %p782_p1 = scmp.ge.s32.totalorder %s35_s26, 2 }
  0x1a   : > { %p789_p4 = por %p73_p13, %p72_p0  ;;  %p464_p5 = scmp.lt.s32.totalorder %s680_s17, 2 }
  0x1b   : > { %p778_p3 = pnand %p448_p12, %p743_p2  ;;  %s795_s30 = sand.u32 1, %s668_s14  }
  0x1c   : > { %s992_s0 = sld [smem:[#allocation14_spill]] }
  0x1d   : > { %p519_p12 = pneg %p778_p3 }
  0x22   : > { %s517_s6 = scalar_lea.hbm %s992_s0, 16 }
  0x23   : > { %p518_p9 = scmp.ne.s32.totalorder %s992_s0, %s517_s6  ;;  %p524_p0 = scmp.lt.u32.totalorder %s517_s6, %s992_s0 }
  0x25   : > { %p520_p11 = pnand %p519_p12, %p518_p9 }
  0x27   : > { %p521_p8 = pneg %p520_p11 }
  0x29   : > { %p526_p13 = pnand %p524_p0, %p521_p8 }
  0x2b   : > { %529 = shalt.err (!%p526_p13)
}
  0x2c   : > { %s682_s11 = smov [#allocation2]   ;;  %s1008_s26 = smov (%p782_p1, %s35_s26), 0 }
  0x2d   : > { %451 = dma.hbm_to_smem (!%p778_p3), %s992_s0, 16, %s682_s11, [#allocation5]  }
  0x2e   : > { %s976_s4 = sshll.u32 %s795_s30, 3  ;;  %s62_s5 = ssub.s32 %s676_s16, %s1008_s26 }
  0x2f   : > { %p63_p8 = scmp.eq.s32.totalorder %s62_s5, 0  ;;  %s422_s27 = sshll.u32 %s676_s16, 7 }
  0x30   : > { %s993_s1 = sld [smem:[#allocation15_spill]]  ;;  %s169_s9 = scalar_lea.vmem [#allocation6], %s976_s4 }
  0x31   : > { %s177_s10 = sshll.u32 %s169_s9, 4  ;;  %p837_p11 = pnand %p464_p5, %p789_p4  ;;  %s831_s10 = int_to_ptr.vmem [resolvable:$true] %s177_s10 }
  0x32   : > { %s829_s28 = scalar_select %p63_p8, %s668_s14, %s65_s25  }
  0x33   : > { %s844_s5 = scalar_lea.hbm %s974_s2, %s422_s27  ;;  %s166_s6 = scalar_lea.sflag [#allocation3], %s795_s30 }
  0x34   : > { %p532_p1 = pneg %p837_p11 }
  0x36   : > { %s824_s8 = scalar_lea.hbm %s993_s1, %s422_s27  ;;  %s535_s9 = scalar_lea.hbm %s993_s1, 256 }
  0x37   : > { %s530_s7 = scalar_lea.hbm %s824_s8, 128  ;;  %p536_p4 = scmp.lt.u32.totalorder %s824_s8, %s993_s1 }
  0x38   : > { %p531_p3 = scmp.ne.s32.totalorder %s824_s8, %s530_s7  ;;  %p537_p5 = scmp.lt.u32.totalorder %s535_s9, %s530_s7 }
  0x39   : > { %p539_p13 = scmp.lt.u32.totalorder %s530_s7, %s824_s8 }
  0x3a   : > { %p533_p9 = pnand %p532_p1, %p531_p3  ;;  %p538_p0 = por %p537_p5, %p536_p4 }
  0x3c   : > { %p534_p12 = pneg %p533_p9  ;;  %p540_p8 = por %p539_p13, %p538_p0 }
  0x3e   : > { %p541_p7 = pnand %p540_p8, %p534_p12 }
  0x40   : > { %544 = shalt.err (!%p541_p7)
}
  0x41   : > { %s545_s27 = scalar_lea.vmem %s831_s10, 128  ;;  %s683_s18 = smov [#allocation6]  }
  0x42   : > { %p546_p3 = scmp.ne.s32.totalorder %s831_s10, %s545_s27  ;;  %s550_s19 = sshll.u32 %s683_s18, 4  ;;  %s551_s19 = int_to_ptr.vmem [resolvable:$false] %s550_s19 }
  0x43   : > { %s552_s0 = scalar_lea.vmem %s551_s19, 256  ;;  %p553_p2 = scmp.lt.s32.totalorder %s831_s10, %s551_s19 }
  0x44   : > { %p548_p9 = pnand %p546_p3, %p532_p1  ;;  %p554_p4 = scmp.lt.s32.totalorder %s552_s0, %s545_s27 }
  0x46   : > { %p549_p6 = pneg %p548_p9  ;;  %p555_p5 = por %p554_p4, %p553_p2 }
  0x48   : > { %p556_p0 = pnand %p555_p5, %p549_p6 }
  0x4a   : > { %559 = shalt.err (!%p556_p0)
}
  0x4b   : > { %455 = dma.hbm_to_vmem [thread:$0]  (!%p837_p11), %s824_s8, 128, %s831_s10, %s166_s6  }
  0x4c   : > { %s995_s4 = sshll.u32 %s795_s30, 3  ;;  %s185_s29 = scalar_lea.sflag [#allocation8], %s795_s30 }
  0x4d   : > { %s188_s7 = scalar_lea.vmem [#allocation7], %s995_s4  ;;  %s560_s9 = scalar_lea.hbm %s844_s5, 128 }
  0x4e   : > { %s196_s25 = sshll.u32 %s188_s7, 4  ;;  %p561_p2 = scmp.ne.s32.totalorder %s844_s5, %s560_s9  ;;  %s197_s25 = int_to_ptr.vmem [resolvable:$true] %s196_s25 }
  0x4f   : > { %s565_s19 = scalar_lea.hbm %s974_s2, 256  ;;  %p566_p12 = scmp.lt.u32.totalorder %s844_s5, %s974_s2 }
  0x50   : > { %p563_p6 = pnand %p561_p2, %p532_p1  ;;  %p567_p13 = scmp.lt.u32.totalorder %s565_s19, %s560_s9 }
  0x51   : > { %p569_p3 = scmp.lt.u32.totalorder %s560_s9, %s844_s5 }
  0x52   : > { %p564_p7 = pneg %p563_p6  ;;  %p568_p8 = por %p567_p13, %p566_p12 }
  0x54   : > { %p570_p9 = por %p569_p3, %p568_p8 }
  0x56   : > { %p571_p4 = pnand %p570_p9, %p564_p7 }
  0x58   : > { %574 = shalt.err (!%p571_p4)
}
  0x59   : > { %s575_s30 = scalar_lea.vmem %s197_s25, 128  ;;  %s684_s8 = smov [#allocation7]  }
  0x5a   : > { %p576_p5 = scmp.ne.s32.totalorder %s197_s25, %s575_s30  ;;  %s580_s10 = sshll.u32 %s684_s8, 4  ;;  %s581_s10 = int_to_ptr.vmem [resolvable:$false] %s580_s10 }
  0x5b   : > { %s582_s6 = scalar_lea.vmem %s581_s10, 256  ;;  %p583_p6 = scmp.lt.s32.totalorder %s197_s25, %s581_s10 }
  0x5c   : > { %p578_p0 = pnand %p576_p5, %p532_p1  ;;  %p584_p10 = scmp.lt.s32.totalorder %s582_s6, %s575_s30 }
  0x5e   : > { %p579_p2 = pneg %p578_p0  ;;  %p585_p12 = por %p584_p10, %p583_p6 }
  0x60   : > { %p586_p13 = pnand %p585_p12, %p579_p2 }
  0x62   : > { %589 = shalt.err (!%p586_p13)
}
  0x63   : > { %458 = dma.hbm_to_vmem [thread:$0]  (!%p837_p11), %s844_s5, 128, %s197_s25, %s185_s29  }
  0x64   : > { %p996_p7 = scmp.ne.s32.totalorder %s988_s24, 0 }
  0x65   : > { %p997_p8 = scmp.ne.s32.totalorder (!%p996_p7), %s984_s20, 0 }
  0x66   : > { %205 = sbr.rel (%p996_p7) target bundleno = 147 (0x93), region = 32 }
  0x6d   : > { %643 = dma.done.wait (%p997_p8), [#allocation5], 16  }
  0x6e   : > { %645 = vsyncadd (%p997_p8), [#allocation5], 4294967280  ;;  %s901_s1 = sand.u32 1, %s664_s13   ;;  %p998_p10 = scmp.ne.s32.totalorder %s985_s21, 0 }
  0x6f   : > { %s904_s4 = sshll.u32 %s901_s1, 3  ;;  %s212_s11 = scalar_lea.sflag [#allocation3], %s901_s1 }
  0x70   : > { %s215_s5 = scalar_lea.vmem [#allocation6], %s904_s4 }
  0x71   : > { %647 = dma.done.wait (%p998_p10), %s212_s11, 128  }
  0x72   : > { %649 = vsyncadd (%p998_p10), %s212_s11, 4294967168  ;;  %s221_s20 = scalar_lea.sflag [#allocation8], %s901_s1  ;;  %s224_s24 = scalar_lea.vmem [#allocation7], %s904_s4 }
  0x73   : > { %651 = dma.done.wait (%p998_p10), %s221_s20, 128  }
  0x74   : > { %653 = vsyncadd (%p998_p10), %s221_s20, 4294967168 }
  0x75   : > { %229 = sfence }
  0x76   : > { %s260_s7 = sld [smem:[#allocation2]]  ;;  %v263_v0 = vld [vmem:[%s224_s24] sm:$0xff]  ;;  %v264_v1 = vld [vmem:[%s215_s5] sm:$0xff]  ;;  %s430_s25 = sld [smem:[#allocation2 + $0x1]]  ;;  %v685_v3 = vmov 0.0  }
  0x77   : > { %s431_s29 = sld [smem:[#allocation2 + $0x2]]  ;;  %vm265_vm0 = vcmp.eq.f32.partialorder %v263_v0, 1.0  ;;  %v271_v2 = vmul.f32 %v264_v1, %v263_v0  ;;  %vm268_vm1 = vcmp.eq.f32.partialorder %v263_v0, -1.0  ;;  %s435_s21 = sshll.u32 %s672_s15, 7 }
  0x78   : > { %v432_v4 = vsel %vm265_vm0, 1.0, %v685_v3  ;;  %v433_v6 = vsel %vm268_vm1, 1.0, %v685_v3  ;;  %s252_s9 = scalar_lea.vmem [#allocation9], %s904_s4  ;;  %s923_s0 = scalar_lea.hbm %s975_s3, %s435_s21 }
  0x79   : > { %v272_v5 = vsub.f32 1.0, %v271_v2  ;;  %s301_s27 = sshll.u32 %s252_s9, 4  ;;  %s288_s30 = scalar_lea.sflag [#allocation4], %s901_s1  ;;  %s925_s27 = int_to_ptr.vmem [resolvable:$true] %s301_s27 }
  0x7a   : > { %s590_s8 = scalar_lea.vmem %s925_s27, 128  ;;  %p999_p1 = scmp.ne.s32.totalorder %s986_s22, 0 }
  0x7b   : > { %v273_v12 = vmax.f32 %v272_v5, 0.0  ;;  %p591_p11 = scmp.ne.s32.totalorder %s925_s27, %s590_s8  ;;  %s686_s15 = smov [#allocation9]  }
  0x7c   : > { %v274_v7 = vstv %s260_s7  ;;  %v276_v9 = vstv %s430_s25  ;;  %s594_s10 = sshll.u32 %s686_s15, 4  ;;  %s595_s10 = int_to_ptr.vmem [resolvable:$false] %s594_s10 }
  0x7d   : > { %v275_v8 = vmul.f32 %v432_v4, %v274_v7  ;;  %v280_v10 = vstv %s431_s29  ;;  %v277_v11 = vmul.f32 %v433_v6, %v276_v9  ;;  %p592_p3 = pnand %p591_p11, %p999_p1  ;;  %s596_s6 = scalar_lea.vmem %s595_s10, 256 }
  0x7e   : > { %v281_v14 = vmul.f32 %v432_v4, %v280_v10  ;;  %p597_p4 = scmp.lt.s32.totalorder %s925_s27, %s595_s10  ;;  %p598_p5 = scmp.lt.s32.totalorder %s596_s6, %s590_s8 }
  0x7f   : > { %v278_v13 = vadd.f32 %v277_v11, %v275_v8  ;;  %p593_p9 = pneg %p592_p3 }
  0x80   : > { %p599_p0 = por %p598_p5, %p597_p4 }
  0x81   : > { %v279_v15 = vmul.f32 %v278_v13, %v273_v12 }
  0x82   : > { %p600_p2 = pnand %p599_p0, %p593_p9 }
  0x83   : > { %v282_v16 = vsub.f32 %v279_v15, %v281_v14 }
  0x85   : > { %286 = vst [vmem:[%s252_s9] sm:$0xff] %v282_v16 }
  0x86   : > { %603 = shalt.err (!%p600_p2)
}
  0x87   : > { %s604_s1 = scalar_lea.hbm %s923_s0, 128  ;;  %s608_s5 = scalar_lea.hbm %s975_s3, 256 }
  0x88   : > { %p605_p6 = scmp.ne.s32.totalorder %s923_s0, %s604_s1  ;;  %p609_p7 = scmp.lt.u32.totalorder %s923_s0, %s975_s3 }
  0x89   : > { %p610_p8 = scmp.lt.u32.totalorder %s608_s5, %s604_s1  ;;  %p612_p11 = scmp.lt.u32.totalorder %s604_s1, %s923_s0 }
  0x8a   : > { %p606_p12 = pnand %p605_p6, %p999_p1 }
  0x8b   : > { %p611_p10 = por %p610_p8, %p609_p7 }
  0x8c   : > { %p607_p13 = pneg %p606_p12 }
  0x8d   : > { %p613_p3 = por %p612_p11, %p611_p10 }
  0x8f   : > { %p614_p9 = pnand %p613_p3, %p607_p13 }
  0x91   : > { %617 = shalt.err (!%p614_p9)
}
  0x92   : > { %446 = dma.vmem_to_hbm [thread:$0]  (%p999_p1), %s925_s27, 128, %s923_s0, %s288_s30  }
  0x93 PF: > { %s313_s7 = sand.u32 1, %s660_s12   ;;  %p1000_p4 = scmp.ne.s32.totalorder %s987_s23, 0 }
  0x94   : > { %p1001_p5 = scmp.ge.s32.totalorder %s680_s17, 2  ;;  %s314_s25 = scalar_lea.sflag [#allocation4], %s313_s7 }
  0x96   : > { %p460_p0 = pnand %p1001_p5, %p1000_p4 }
  0x98   : > { %655 = dma.done.wait (!%p460_p0), %s314_s25, 128  }
  0x99   : > { %657 = vsyncadd (!%p460_p0), %s314_s25, 4294967168  ;;  %s23_s17 = sadd.s32 1, %s680_s17   ;;  %s1002_s12 = smov %s664_s13 }
  0x9a   : > { %p20_p2 = scmp.ge.s32.totalorder %s23_s17, 4   ;;  %s1003_s13 = smov %s668_s14 }
  0x9b   : > { %s1004_s14 = smov %s829_s28  ;;  %s1005_s15 = smov %s676_s16 }
  0x9c   : > { %s1006_s16 = smov %s1008_s26  ;;  %22 = sbr.rel (!%p20_p2) target bundleno = 12 (0xc), region = 99 }
  0xa3   :  { %319 = vsyncpa [#allocation3], 1 }
  0xa4   :  { %321 = vsyncpa [#allocation3 + $0x1], 1 }
  0xa5   :  { %322 = vsyncpa [#allocation8], 1 }
  0xa6   :  { %324 = vsyncpa [#allocation8 + $0x1], 1 }
  0xa7   :  { %325 = vsyncpa [#allocation4], 1 }
  0xa8   :  { %327 = vsyncpa [#allocation4 + $0x1], 1 }
  0xa9   :  { %328 = vsyncpa [#allocation5], 1 }
  0xaa   :  { %330 = vsyncpa [#allocation5 + $0x1], 1 }

</bundles_post_ra>
